<compile_context>
chip_gen: v5e
topology: v5e:2x2
jax: 0.10.0
libtpu: 0.0.40
codegen_flags: <defaults>
</compile_context>

<pallas_src>
import jax
import jax.numpy as jnp
from jax.experimental import pallas as pl
from jax.experimental.pallas import tpu as pltpu

_MIB = 1024 * 1024


def _h_swish_kernel(x_ref, o_ref):
    # y = x * relu6(x + 3) / 6 -- ~5 VPU ops/element, fully hidden behind HBM.
    # Compute in f32 so low-precision inputs match PyTorch's float math.
    x = x_ref[...].astype(jnp.float32)
    y = x * jnp.clip(x + 3.0, 0.0, 6.0) / 6.0
    o_ref[...] = y.astype(o_ref.dtype)


def _tpu_vmem_and_cores():
    """(per-core VMEM bytes, TensorCores per chip), with a safe fallback."""
    vmem = 64 * _MIB
    try:
        vmem = int(pltpu.get_tpu_info().vmem_capacity_bytes)
    except Exception:
        pass
    # v7x: 64 MiB per TC and 2 TCs/chip; v5e/v6e: 128 MiB and 1 TC.
    num_cores = 2 if vmem <= 64 * _MIB else 1
    return vmem, num_cores


def _sublane_align(dtype_bytes):
    # 8 rows for f32, 16 for bf16/f16, 32 for int8/fp8 (sub-32-bit packing).
    return 8 * max(1, 4 // max(1, dtype_bytes))


def _choose_lane_width(total, cap=4096):
    """Largest multiple-of-128 lane width dividing `total` (prefer >= 8 rows)."""
    cap = (min(cap, total) // 128) * 128
    fallback = None
    for lane in range(cap, 0, -128):
        if total % lane == 0:
            if fallback is None:
                fallback = lane
            if total // lane >= 8:
                return lane
    return fallback


def _tile_plan(n_rows, n_cols, dtype_bytes, vmem_bytes, num_cores):
    """Pick (row_tile, col_tile): double-buffered in+out fits the VMEM budget,
    blocks sit at the multi-MiB roofline knee, and big inputs get >= 2 blocks
    per TensorCore (even grid on v7x)."""
    if vmem_bytes <= 64 * _MIB:               # v7x-like: 64 MiB/TC, 3.2 TB/s HBM
        max_block = (vmem_bytes * 3 // 4) // 4    # ~12 MiB per input block
        min_block = min(4 * _MIB, max_block)      # keep blocks >= ~4 MiB
    else:                                     # v5e / v6e: 128 MiB, 1 TC
        max_block = (vmem_bytes // 2) // 4        # ~16 MiB per input block
        min_block = min(1 * _MIB, max_block)

    sub = _sublane_align(dtype_bytes)
    row_bytes = n_cols * dtype_bytes
    total_bytes = n_rows * row_bytes

    # --- column tiling (fallback layouts with very wide rows / 1-D inputs) ---
    if row_bytes * min(n_rows, sub) > max_block and n_cols > 128:
        row_tile = n_rows if n_rows <= sub else sub
        col_elems = max(128, max_block // (row_tile * dtype_bytes))
        col_tile = max(128, (col_elems // 128) * 128)
        if col_tile >= n_cols:
            col_tile = n_cols
        return row_tile, col_tile

    col_tile = n_cols

    # --- row tiling ---
    # Enough steps to keep each TensorCore busy with >= 2 blocks, but never
    # shrink blocks below min_block (tiny inputs stay a single block).
    target_steps = min(2 * num_cores, max(1, total_bytes // min_block))
    steps = max(target_steps, pl.cdiv(total_bytes, max_block))
    if num_cores > 1 and steps > 1 and steps % num_cores:
        steps += 1                           # balanced work across v7x's 2 TCs
    if steps <= 1:
        return n_rows, col_tile

    rt = max(1, min(n_rows, max_block // max(1, row_bytes)))
    rt = min(rt, pl.cdiv(n_rows, steps))
    if rt < n_rows:
        rt = max(sub, (rt // sub) * sub)     # dtype-aware sublane alignment
    row_tile = min(rt, n_rows)

    # Prefer an even grid on v7x so both TensorCores get balanced work.
    grid_r = pl.cdiv(n_rows, row_tile)
    if num_cores > 1 and grid_r > 1 and grid_r % num_cores:
        for g in range(grid_r + 1, grid_r + 1 + 2 * num_cores):
            cand = max(sub, (pl.cdiv(n_rows, g) // sub) * sub)
            if cand * row_bytes <= max_block and pl.cdiv(n_rows, cand) % num_cores == 0:
                row_tile = cand
                break
    return row_tile, col_tile


def h_swish(x, row_tile=None, col_tile=None, donate=False):
    """h_swish forward. Same shape/dtype as input (NCHW in the module)."""
    orig_shape = x.shape
    total = int(x.size)
    if total == 0:
        return x

    dtype_bytes = jnp.dtype(x.dtype).itemsize
    vmem_bytes, num_cores = _tpu_vmem_and_cores()
    sub = _sublane_align(dtype_bytes)

    # Elementwise op => layout is free. Re-factorize the flat element count into
    # (rows, lanes) with a large multiple-of-128 lane width for unmasked stores.
    lane = _choose_lane_width(total)
    if lane is not None:
        n_rows, n_cols = total // lane, lane
    elif x.ndim >= 2:
        n_cols = int(orig_shape[-1]) * (int(orig_shape[-2]) if x.ndim >= 3 else 1)
        n_rows = total // n_cols
    else:
        n_rows, n_cols = 1, total
    x2d = x.reshape(n_rows, n_cols)

    rt, ct = _tile_plan(n_rows, n_cols, dtype_bytes, vmem_bytes, num_cores)
    if row_tile is None:
        row_tile = rt
    if col_tile is None:
        col_tile = ct
    # Validate (user-supplied) tiles against the (8,128) BlockSpec rule.
    row_tile = min(int(row_tile), n_rows)
    col_tile = min(int(col_tile), n_cols)
    if row_tile != n_rows and row_tile % sub:
        row_tile = max(sub, (row_tile // sub) * sub)
    if col_tile != n_cols and col_tile % 128:
        col_tile = max(128, (col_tile // 128) * 128)
    row_tile = min(row_tile, n_rows)
    col_tile = min(col_tile, n_cols)

    grid = (pl.cdiv(n_rows, row_tile), pl.cdiv(n_cols, col_tile))

    # Scoped VMEM: 2 double-buffered copies each of the input and output block
    # plus compiler scratch slack, never above physical VMEM.
    block_bytes = row_tile * col_tile * dtype_bytes
    vmem_limit = int(min(vmem_bytes, max(16 * _MIB, 4 * block_bytes + 4 * _MIB)))

    extra = {"input_output_aliases": {0: 0}} if donate else {}

    out2d = pl.pallas_call(
        _h_swish_kernel,
        out_shape=jax.ShapeDtypeStruct((n_rows, n_cols), x.dtype),
        grid_spec=pltpu.PrefetchScalarGridSpec(
            num_scalar_prefetch=0,
            grid=grid,
            in_specs=[pl.BlockSpec((row_tile, col_tile), lambda i, j: (i, j))],
            out_specs=pl.BlockSpec((row_tile, col_tile), lambda i, j: (i, j)),
        ),
        compiler_params=pltpu.CompilerParams(
            dimension_semantics=("parallel", "parallel"),
            vmem_limit_bytes=vmem_limit,
        ),
        **extra,
    )(x2d)

    return out2d.reshape(orig_shape)


def h_swish_reference(x):
    """Pure-JAX reference matching the PyTorch forward: x * relu6(x + 3) / 6."""
    return x * jnp.clip(x + 3.0, 0.0, 6.0) / 6.0


if __name__ == "__main__":
    key = jax.random.PRNGKey(0)
    B, C, H, W = 2, 4, 16, 16
    # Scale so values cross both relu6 breakpoints (x < -3 and x > 3).
    x = jax.random.normal(key, (B, C, H, W), dtype=jnp.float32) * 4.0

    out = jax.block_until_ready(h_swish(x))

    ref = h_swish_reference(x)
    assert out.shape == (B, C, H, W)
    assert out.dtype == x.dtype
    assert jnp.allclose(out, ref, atol=1e-5, rtol=1e-5), "mismatch vs reference"

    print("KERNEL_OK")
</pallas_src>

<mosaic_0001>
module attributes {stable_mosaic.version = 11 : i64} {
  func.func @_h_swish_kernel(%arg0: i32, %arg1: i32, %arg2: memref<8x256xf32, #tpu.memory_space<vmem>>, %arg3: memref<8x256xf32, #tpu.memory_space<vmem>>) attributes {dimension_semantics = [#tpu.dimension_semantics<parallel>, #tpu.dimension_semantics<parallel>], iteration_bounds = array<i64: 1, 1>, scalar_prefetch = 0 : i64, scratch_operands = 0 : i64, tpu.core_type = #tpu.core_type<tc>, window_params = [{transform_indices = @transform_0, window_bounds = array<i64: 8, 256>}, {transform_indices = @transform_1, window_bounds = array<i64: 8, 256>}]} {
    %c0 = arith.constant 0 : index
    %c0_0 = arith.constant 0 : index
    %0 = vector.load %arg2[%c0, %c0_0] : memref<8x256xf32, #tpu.memory_space<vmem>>, vector<8x256xf32>
    %cst = arith.constant 3.000000e+00 : f32
    %1 = vector.broadcast %cst : f32 to vector<8x256xf32>
    %2 = arith.addf %0, %1 : vector<8x256xf32>
    %cst_1 = arith.constant 0.000000e+00 : f32
    %cst_2 = arith.constant 6.000000e+00 : f32
    %3 = vector.broadcast %cst_1 : f32 to vector<8x256xf32>
    %4 = arith.maximumf %3, %2 : vector<8x256xf32>
    %5 = vector.broadcast %cst_2 : f32 to vector<8x256xf32>
    %6 = arith.minimumf %5, %4 : vector<8x256xf32>
    %7 = arith.mulf %0, %6 : vector<8x256xf32>
    %cst_3 = arith.constant 6.000000e+00 : f32
    %8 = vector.broadcast %cst_3 : f32 to vector<8x256xf32>
    %9 = arith.divf %7, %8 : vector<8x256xf32>
    %c0_4 = arith.constant 0 : index
    %c0_5 = arith.constant 0 : index
    %10 = vector.load %arg3[%c0_4, %c0_5] : memref<8x256xf32, #tpu.memory_space<vmem>>, vector<8x256xf32>
    tpu.vector_store %arg3[%c0_4, %c0_5], %9 {strides = array<i32>} : memref<8x256xf32, #tpu.memory_space<vmem>>, vector<8x256xf32>,
    return
  }
  func.func @transform_0(%arg0: i32, %arg1: i32) -> (i32, i32) {
    %c0_i32 = arith.constant 0 : i32
    return %arg0, %arg1 : i32, i32
  }
  func.func @transform_1(%arg0: i32, %arg1: i32) -> (i32, i32) {
    %c0_i32 = arith.constant 0 : i32
    return %arg0, %arg1 : i32, i32
  }
}

</mosaic_0001>

<bundles_post_ra>
// kernel: tpu_custom_call.1
= control target key start
LH: loop header
LB: loop body
LE: loop exit
PB: predicated region body
PF: predicated region fallthrough
CT: control target
= control target key end

     0   :  { %6 = vsyncpa [#allocation3], 0  ;;  %s137_s0 = inlined_call_operand.hbm [shape: f32[8,256], index: 0, kind: input, shape index: {}]   ;;  %s138_s1 = inlined_call_operand.hbm [shape: f32[8,256], index: 1, kind: output, shape index: {}]  }
   0x1   :  { %7 = vsyncpa [#allocation4], 0  ;;  %s13_s8 = sshll.u32 %s137_s0, 4  ;;  %s118_s9 = smov [#allocation2]   ;;  %s14_s8 = int_to_ptr.hbm [resolvable:$true] %s13_s8 }
   0x2   :  { %s15_s10 = sshll.u32 %s118_s9, 4  ;;  %s16_s10 = int_to_ptr.vmem [resolvable:$true] %s15_s10 }
   0x3   :  { %18 = dma.hbm_to_vmem [thread:$0]  %s14_s8, 256, %s16_s10, [#allocation3]  }
   0x4   :  { %114 = dma.done.wait [#allocation3], 256  }
   0x5   :  { %115 = vsyncadd [#allocation3], 4294967040  ;;  %v119_v0 = vmov 6.0   ;;  %v23_v2 = vld [vmem:[#allocation2] sm:$0xff]  ;;  %v24_v3 = vld [vmem:[#allocation2 + $0x8] sm:$0xff]  ;;  %s120_s0 = smov [#allocation5]  }
   0x6   :  { %64 = vrcp.f32 %v119_v0  ;;  %v25_v4 = vadd.f32 3.0, %v23_v2  ;;  %v26_v6 = vadd.f32 3.0, %v24_v3  ;;  %s49_s11 = sshll.u32 %s120_s0, 4  ;;  %s51_s14 = sshll.u32 %s138_s1, 4  ;;  %s50_s11 = int_to_ptr.vmem [resolvable:$true] %s49_s11  ;;  %s52_s14 = int_to_ptr.hbm [resolvable:$true] %s51_s14 }
   0x8   :  { %v27_v7 = vmax.f32 %v25_v4, 0.0  ;;  %v28_v9 = vmax.f32 %v26_v6, 0.0 }
   0xa   :  { %v29_v10 = vmin.f32 %v27_v7, 6.0  ;;  %v30_v12 = vmin.f32 %v28_v9, 6.0 }
   0xc   :  { %v65_v1 = vpop.eup %64  ;;  %v31_v13 = vmul.f32 %v29_v10, %v23_v2  ;;  %v32_v15 = vmul.f32 %v30_v12, %v24_v3 }
   0xd   :  { %v34_v5 = vmul.f32 6.0, %v65_v1  ;;  %vm38_vm0 = vweird.f32 %v65_v1 }
   0xf   :  { %v35_v8 = vsub.f32 1.0, %v34_v5 }
  0x11   :  { %v36_v11 = vmul.f32 %v65_v1, %v35_v8 }
  0x13   :  { %v37_v14 = vadd.f32 %v65_v1, %v36_v11 }
  0x15   :  { %v39_v16 = vsel %vm38_vm0, %v65_v1, %v37_v14 }
  0x16   :  { %v40_v17 = vmul.f32 %v39_v16, %v31_v13  ;;  %v41_v18 = vmul.f32 %v39_v16, %v32_v15 }
  0x18   :  { %42 = vst [vmem:[#allocation5] sm:$0xff] %v40_v17 }
  0x19   :  { %43 = vst [vmem:[#allocation5 + $0x8] sm:$0xff] %v41_v18 }
  0x1a   :  { %54 = dma.vmem_to_hbm [thread:$0]  %s50_s11, 256, %s52_s14, [#allocation4]  }
  0x1b   :  { %116 = dma.done.wait [#allocation4], 256  }
  0x1c   :  { %117 = vsyncadd [#allocation4], 4294967040 }
  0x1d   :  { %59 = vsyncpa [#allocation3], 1 }
  0x1e   :  { %60 = vsyncpa [#allocation4], 1 }

</bundles_post_ra>
